<compile_context>
chip_gen: v5e
topology: v5e:2x2
jax: 0.10.0
libtpu: 0.0.40
codegen_flags: <defaults>
</compile_context>

<pallas_src>
import functools

import jax
import jax.numpy as jnp
from jax.experimental import pallas as pl
from jax.experimental.pallas import tpu as pltpu


def _mha_kernel(x_ref, wqkv_ref, wp_ref, bp_ref, o_ref, slab_ref, *, n_head):
    x = x_ref[...]                                    # (bb, T, C), stored dtype
    bb, T, C = x.shape
    hs = C // n_head
    scale = float(hs) ** -0.5
    cdt = x.dtype                                     # MXU input dtype (bf16 in prod)

    # ---- Fused QKV projection: one lane-dense (N=3C), full-depth (K=C) matmul.
    qkv = jnp.einsum("btc,ck->btk", x, wqkv_ref[...],
                     preferred_element_type=jnp.float32)
    qkv = qkv.astype(cdt)                             # single cast back to MXU dtype

    # Causal mask, built once per grid step.
    row = jax.lax.broadcasted_iota(jnp.int32, (T, T), 0)
    col = jax.lax.broadcasted_iota(jnp.int32, (T, T), 1)
    causal = (col <= row)[None, :, :]

    # ---- Per-head attention. Static loop is fine at n_head=4; each head's
    # intermediates are flushed to the VMEM slab so live ranges stay short.
    # TODO(synk): at real n_head (8-16) make heads a grid axis ("arbitrary")
    # or a lax.fori_loop to avoid vreg spills, and tile KV flash-style for
    # large T instead of materializing the full (T, T) score block.
    for h in range(n_head):
        q_h = qkv[..., h * hs:(h + 1) * hs]                       # (bb, T, hs)
        k_h = qkv[..., C + h * hs:C + (h + 1) * hs]
        v_h = qkv[..., 2 * C + h * hs:2 * C + (h + 1) * hs]

        s = jnp.einsum("btd,bsd->bts", q_h, k_h,
                       preferred_element_type=jnp.float32) * scale
        s = jnp.where(causal, s, -1e30)
        m = jnp.max(s, axis=-1, keepdims=True)
        p = jnp.exp(s - m)                                         # unnormalized
        denom = jnp.sum(p, axis=-1, keepdims=True)
        # TODO(synk): training-mode attention dropout (pltpu.prng_seed /
        # prng_random_bits masking) not implemented; eval mode is identity.

        o_h = jnp.einsum("bts,bsd->btd", p.astype(cdt), v_h,
                         preferred_element_type=jnp.float32)
        # Normalize the small (T, hs) output instead of the (T, T) probs;
        # approx reciprocal lands in the EUP slot (no VALU divide).
        o_h = o_h * pl.reciprocal(denom, approx=True)

        slab_ref[:, :, h * hs:(h + 1) * hs] = o_h.astype(slab_ref.dtype)

    # ---- Output projection: ONE full-depth (K=C) matmul over the assembled slab.
    y = jnp.einsum("btc,ck->btk", slab_ref[...], wp_ref[...],
                   preferred_element_type=jnp.float32)
    y = y + bp_ref[...].astype(jnp.float32)
    # TODO(synk): training-mode output dropout not implemented; eval is identity.
    o_ref[...] = y.astype(o_ref.dtype)


@functools.partial(jax.jit, static_argnames=("block_b",))
def multi_head_attention(x, wq, wk, wv, wp, bp, *, block_b=None):
    """Causal multi-head attention + output projection (eval mode).

    x : (B, T, C)
    wq, wk, wv : (n_head, C, head_size)    (per-head, x @ W layout)
    wp : (n_head, head_size, C)            (row-blocks of the full proj weight)
    bp : (C,)

    block_b: sequences per grid step. Default B (single step — best on 1-TC
    v5e/v6e). On v7x pass B // 2 so the "parallel" batch axis shards over its
    2 TensorCores.
    """
    B, T, C = x.shape
    n_head, _, hs = wq.shape
    assert n_head * hs == C
    if block_b is None:
        block_b = B
    assert B % block_b == 0, "B must be divisible by block_b"

    # Stack per-head weights into fused layouts (negligible here; in a real
    # model pre-stack these once outside the hot path).
    wq_all = jnp.transpose(wq, (1, 0, 2)).reshape(C, C)
    wk_all = jnp.transpose(wk, (1, 0, 2)).reshape(C, C)
    wv_all = jnp.transpose(wv, (1, 0, 2)).reshape(C, C)
    wqkv = jnp.concatenate([wq_all, wk_all, wv_all], axis=1)      # (C, 3C)
    wp_full = wp.reshape(C, C)                                    # (C, C)
    bp2 = bp.reshape(1, C)

    # VMEM budget from actual tile sizes (x2 for Pallas double-buffering) plus
    # headroom for Mosaic scratch and in-kernel f32 intermediates.
    itm = x.dtype.itemsize
    io_bytes = 2 * 2 * (block_b * T * C * itm)                    # x tile + out tile
    w_bytes = 2 * (3 * C * C + C * C + C) * itm                   # wqkv + wp + bp
    slab_bytes = block_b * T * C * itm
    interm_bytes = 4 * block_b * T * (3 * C + n_head * T + 2 * C) # rough f32 bound
    vmem_limit = min(io_bytes + w_bytes + slab_bytes + interm_bytes
                     + 16 * 1024 * 1024, 100 * 1024 * 1024)

    kernel = functools.partial(_mha_kernel, n_head=n_head)
    out = pl.pallas_call(
        kernel,
        out_shape=jax.ShapeDtypeStruct((B, T, C), x.dtype),
        grid_spec=pltpu.PrefetchScalarGridSpec(
            num_scalar_prefetch=0,
            grid=(B // block_b,),
            in_specs=[
                pl.BlockSpec((block_b, T, C), lambda b: (b, 0, 0)),   # x tile
                # Resident weights (constant index maps). TODO(synk): at GPT
                # widths on v7x (64 MiB VMEM) add pipeline_mode=pl.Buffered(1)
                # and a head/hidden grid axis to cut the weight footprint.
                pl.BlockSpec((C, 3 * C), lambda b: (0, 0)),           # Wqkv
                pl.BlockSpec((C, C), lambda b: (0, 0)),               # Wp
                pl.BlockSpec((1, C), lambda b: (0, 0)),               # bp
            ],
            out_specs=pl.BlockSpec((block_b, T, C), lambda b: (b, 0, 0)),
            scratch_shapes=[pltpu.VMEM((block_b, T, C), x.dtype)],    # head slab
        ),
        compiler_params=pltpu.CompilerParams(
            dimension_semantics=("parallel",),
            vmem_limit_bytes=vmem_limit,
        ),
    )(x, wqkv, wp_full, bp2)
    return out


def _reference(x, wq, wk, wv, wp, bp):
    """Pure-JAX reference mirroring the PyTorch module (eval mode)."""
    B, T, C = x.shape
    n_head, _, hs = wq.shape
    mask = jnp.tril(jnp.ones((T, T), dtype=bool))
    outs = []
    for h in range(n_head):
        q = x @ wq[h]
        k = x @ wk[h]
        v = x @ wv[h]
        s = (q @ jnp.swapaxes(k, -1, -2)) * (hs ** -0.5)
        s = jnp.where(mask, s, -jnp.inf)
        p = jax.nn.softmax(s, axis=-1)
        outs.append(p @ v)
    att = jnp.concatenate(outs, axis=-1)                              # (B, T, C)
    w_proj = jnp.concatenate([wp[h] for h in range(n_head)], axis=0)  # (C, C)
    return att @ w_proj + bp


if __name__ == "__main__":
    # Shapes implied by the module: batch=2, block_size=8, n_embd=32, n_head=4.
    B, T, C, n_head = 2, 8, 32, 4
    hs = C // n_head

    key = jax.random.PRNGKey(0)
    kx, kq, kk, kv, kp, kb = jax.random.split(key, 6)

    x = jax.random.normal(kx, (B, T, C), dtype=jnp.float32)
    lim = 1.0 / (C ** 0.5)
    wq = jax.random.uniform(kq, (n_head, C, hs), jnp.float32, -lim, lim)
    wk = jax.random.uniform(kk, (n_head, C, hs), jnp.float32, -lim, lim)
    wv = jax.random.uniform(kv, (n_head, C, hs), jnp.float32, -lim, lim)
    wp = jax.random.uniform(kp, (n_head, hs, C), jnp.float32, -lim, lim)
    bp = jax.random.uniform(kb, (C,), jnp.float32, -lim, lim)

    y_ref = _reference(x, wq, wk, wv, wp, bp)

    # f32 path. Tolerance is 1e-2 (not 1e-5) because the softmax normalization
    # uses the approximate EUP reciprocal (~1e-3 worst-case relative error);
    # structural errors would show up as O(0.1-1) deviations.
    y = multi_head_attention(x, wq, wk, wv, wp, bp)
    jax.block_until_ready(y)
    assert jnp.allclose(y, y_ref, atol=1e-2, rtol=1e-2), "f32 mismatch vs reference"

    # bf16 MXU path: bf16 matmul inputs, f32 accumulation + f32 softmax/bias.
    tobf = lambda a: a.astype(jnp.bfloat16)
    y_bf = multi_head_attention(tobf(x), tobf(wq), tobf(wk), tobf(wv),
                                tobf(wp), tobf(bp))
    jax.block_until_ready(y_bf)
    assert jnp.allclose(y_bf.astype(jnp.float32), y_ref, atol=1e-1, rtol=1e-1), \
        "bf16 mismatch vs reference"

    print("KERNEL_OK")
</pallas_src>

<mosaic_0001>
module attributes {stable_mosaic.version = 11 : i64} {
  func.func @_mha_kernel(%arg0: i32, %arg1: memref<2x8x32xf32, #tpu.memory_space<vmem>>, %arg2: memref<32x96xf32, #tpu.memory_space<vmem>>, %arg3: memref<32x32xf32, #tpu.memory_space<vmem>>, %arg4: memref<1x32xf32, #tpu.memory_space<vmem>>, %arg5: memref<2x8x32xf32, #tpu.memory_space<vmem>>, %arg6: memref<2x8x32xf32, #tpu.memory_space<vmem>>) attributes {dimension_semantics = [#tpu.dimension_semantics<parallel>], iteration_bounds = array<i64: 1>, scalar_prefetch = 0 : i64, scratch_operands = 1 : i64, tpu.core_type = #tpu.core_type<tc>, window_params = [{transform_indices = @transform_0, window_bounds = array<i64: 2, 8, 32>}, {pipeline_mode = #tpu.pipeline_mode<synchronous>, transform_indices = @transform_1, window_bounds = array<i64: 32, 96>}, {pipeline_mode = #tpu.pipeline_mode<synchronous>, transform_indices = @transform_2, window_bounds = array<i64: 32, 32>}, {pipeline_mode = #tpu.pipeline_mode<synchronous>, transform_indices = @transform_3, window_bounds = array<i64: 1, 32>}, {transform_indices = @transform_4, window_bounds = array<i64: 2, 8, 32>}]} {
    %c0 = arith.constant 0 : index
    %c0_0 = arith.constant 0 : index
    %c0_1 = arith.constant 0 : index
    %0 = vector.load %arg1[%c0, %c0_0, %c0_1] : memref<2x8x32xf32, #tpu.memory_space<vmem>>, vector<2x8x32xf32>
    %c0_2 = arith.constant 0 : index
    %c0_3 = arith.constant 0 : index
    %1 = vector.load %arg2[%c0_2, %c0_3] : memref<32x96xf32, #tpu.memory_space<vmem>>, vector<32x96xf32>
    "tpu.trace_start"() <{level = 10 : i32, message = "btc,ck->btk"}> : () -> ()
    %cst = arith.constant dense<0.000000e+00> : vector<2x8x96xf32>
    %2 = tpu.matmul %0, %1, %cst {dimension_numbers = #tpu.dot_dimension_numbers<[2], [0], [0, 1], [1], [0, 0, 0, 1, 1, 1], [], []>} : vector<2x8x32xf32>, vector<32x96xf32>, vector<2x8x96xf32> -> vector<2x8x96xf32>
    "tpu.trace_stop"() : () -> ()
    %3 = tpu.iota {dimensions = array<i32: 0>} : vector<8x8xi32>
    %4 = tpu.iota {dimensions = array<i32: 1>} : vector<8x8xi32>
    %5 = arith.cmpi sle, %4, %3 : vector<8x8xi32>
    %6 = vector.shape_cast %5 : vector<8x8xi1> to vector<1x8x8xi1>
    %7 = vector.extract_strided_slice %2 {offsets = [0, 0, 0], sizes = [2, 8, 8], strides = [1, 1, 1]} : vector<2x8x96xf32> to vector<2x8x8xf32>
    %8 = vector.extract_strided_slice %2 {offsets = [0, 0, 32], sizes = [2, 8, 8], strides = [1, 1, 1]} : vector<2x8x96xf32> to vector<2x8x8xf32>
    %9 = vector.extract_strided_slice %2 {offsets = [0, 0, 64], sizes = [2, 8, 8], strides = [1, 1, 1]} : vector<2x8x96xf32> to vector<2x8x8xf32>
    "tpu.trace_start"() <{level = 10 : i32, message = "btd,bsd->bts"}> : () -> ()
    %cst_4 = arith.constant dense<0.000000e+00> : vector<2x8x8xf32>
    %10 = tpu.matmul %7, %8, %cst_4 {dimension_numbers = #tpu.dot_dimension_numbers<[2], [2], [1], [1], [0, 0, 0, 1, 1, 1], [0], [0]>} : vector<2x8x8xf32>, vector<2x8x8xf32>, vector<2x8x8xf32> -> vector<2x8x8xf32>
    "tpu.trace_stop"() : () -> ()
    %cst_5 = arith.constant 0.353553385 : f32
    %11 = vector.broadcast %cst_5 : f32 to vector<2x8x8xf32>
    %12 = arith.mulf %10, %11 : vector<2x8x8xf32>
    %cst_6 = arith.constant -1.000000e+30 : f32
    %13 = vector.shape_cast %6 : vector<1x8x8xi1> to vector<1x8x8xi1>
    %14 = vector.broadcast %13 : vector<1x8x8xi1> to vector<2x8x8xi1>
    %15 = vector.broadcast %cst_6 : f32 to vector<2x8x8xf32>
    %16 = arith.select %14, %12, %15 : vector<2x8x8xi1>, vector<2x8x8xf32>
    %cst_7 = arith.constant dense<0xFF800000> : vector<2x8xf32>
    %17 = vector.multi_reduction <maximumf>, %16, %cst_7 [2] : vector<2x8x8xf32> to vector<2x8xf32>
    %18 = vector.shape_cast %17 : vector<2x8xf32> to vector<2x8x1xf32>
    %19 = vector.broadcast %18 : vector<2x8x1xf32> to vector<2x8x8xf32>
    %20 = arith.subf %16, %19 : vector<2x8x8xf32>
    %21 = math.exp %20 : vector<2x8x8xf32>
    %cst_8 = arith.constant dense<0.000000e+00> : vector<2x8xf32>
    %22 = vector.multi_reduction <add>, %21, %cst_8 [2] : vector<2x8x8xf32> to vector<2x8xf32>
    %23 = vector.shape_cast %22 : vector<2x8xf32> to vector<2x8x1xf32>
    "tpu.trace_start"() <{level = 10 : i32, message = "bts,bsd->btd"}> : () -> ()
    %cst_9 = arith.constant dense<0.000000e+00> : vector<2x8x8xf32>
    %24 = tpu.matmul %21, %9, %cst_9 {dimension_numbers = #tpu.dot_dimension_numbers<[2], [1], [1], [2], [0, 0, 0, 1, 1, 2], [0], [0]>} : vector<2x8x8xf32>, vector<2x8x8xf32>, vector<2x8x8xf32> -> vector<2x8x8xf32>
    "tpu.trace_stop"() : () -> ()
    %25 = tpu.reciprocal %23 {approx = true} : vector<2x8x1xf32> -> vector<2x8x1xf32>
    %26 = vector.broadcast %25 : vector<2x8x1xf32> to vector<2x8x8xf32>
    %27 = arith.mulf %24, %26 : vector<2x8x8xf32>
    %c0_10 = arith.constant 0 : index
    %c0_11 = arith.constant 0 : index
    %c0_12 = arith.constant 0 : index
    %28 = vector.load %arg6[%c0_10, %c0_11, %c0_12] : memref<2x8x32xf32, #tpu.memory_space<vmem>>, vector<2x8x8xf32>
    tpu.vector_store %arg6[%c0_10, %c0_11, %c0_12], %27 {strides = array<i32>} : memref<2x8x32xf32, #tpu.memory_space<vmem>>, vector<2x8x8xf32>,
    %29 = vector.extract_strided_slice %2 {offsets = [0, 0, 8], sizes = [2, 8, 8], strides = [1, 1, 1]} : vector<2x8x96xf32> to vector<2x8x8xf32>
    %30 = vector.extract_strided_slice %2 {offsets = [0, 0, 40], sizes = [2, 8, 8], strides = [1, 1, 1]} : vector<2x8x96xf32> to vector<2x8x8xf32>
    %31 = vector.extract_strided_slice %2 {offsets = [0, 0, 72], sizes = [2, 8, 8], strides = [1, 1, 1]} : vector<2x8x96xf32> to vector<2x8x8xf32>
    "tpu.trace_start"() <{level = 10 : i32, message = "btd,bsd->bts"}> : () -> ()
    %cst_13 = arith.constant dense<0.000000e+00> : vector<2x8x8xf32>
    %32 = tpu.matmul %29, %30, %cst_13 {dimension_numbers = #tpu.dot_dimension_numbers<[2], [2], [1], [1], [0, 0, 0, 1, 1, 1], [0], [0]>} : vector<2x8x8xf32>, vector<2x8x8xf32>, vector<2x8x8xf32> -> vector<2x8x8xf32>
    "tpu.trace_stop"() : () -> ()
    %cst_14 = arith.constant 0.353553385 : f32
    %33 = vector.broadcast %cst_14 : f32 to vector<2x8x8xf32>
    %34 = arith.mulf %32, %33 : vector<2x8x8xf32>
    %cst_15 = arith.constant -1.000000e+30 : f32
    %35 = vector.shape_cast %6 : vector<1x8x8xi1> to vector<1x8x8xi1>
    %36 = vector.broadcast %35 : vector<1x8x8xi1> to vector<2x8x8xi1>
    %37 = vector.broadcast %cst_15 : f32 to vector<2x8x8xf32>
    %38 = arith.select %36, %34, %37 : vector<2x8x8xi1>, vector<2x8x8xf32>
    %cst_16 = arith.constant dense<0xFF800000> : vector<2x8xf32>
    %39 = vector.multi_reduction <maximumf>, %38, %cst_16 [2] : vector<2x8x8xf32> to vector<2x8xf32>
    %40 = vector.shape_cast %39 : vector<2x8xf32> to vector<2x8x1xf32>
    %41 = vector.broadcast %40 : vector<2x8x1xf32> to vector<2x8x8xf32>
    %42 = arith.subf %38, %41 : vector<2x8x8xf32>
    %43 = math.exp %42 : vector<2x8x8xf32>
    %cst_17 = arith.constant dense<0.000000e+00> : vector<2x8xf32>
    %44 = vector.multi_reduction <add>, %43, %cst_17 [2] : vector<2x8x8xf32> to vector<2x8xf32>
    %45 = vector.shape_cast %44 : vector<2x8xf32> to vector<2x8x1xf32>
    "tpu.trace_start"() <{level = 10 : i32, message = "bts,bsd->btd"}> : () -> ()
    %cst_18 = arith.constant dense<0.000000e+00> : vector<2x8x8xf32>
    %46 = tpu.matmul %43, %31, %cst_18 {dimension_numbers = #tpu.dot_dimension_numbers<[2], [1], [1], [2], [0, 0, 0, 1, 1, 2], [0], [0]>} : vector<2x8x8xf32>, vector<2x8x8xf32>, vector<2x8x8xf32> -> vector<2x8x8xf32>
    "tpu.trace_stop"() : () -> ()
    %47 = tpu.reciprocal %45 {approx = true} : vector<2x8x1xf32> -> vector<2x8x1xf32>
    %48 = vector.broadcast %47 : vector<2x8x1xf32> to vector<2x8x8xf32>
    %49 = arith.mulf %46, %48 : vector<2x8x8xf32>
    %c0_19 = arith.constant 0 : index
    %c0_20 = arith.constant 0 : index
    %c8 = arith.constant 8 : index
    %50 = vector.load %arg6[%c0_19, %c0_20, %c8] : memref<2x8x32xf32, #tpu.memory_space<vmem>>, vector<2x8x8xf32>
    tpu.vector_store %arg6[%c0_19, %c0_20, %c8], %49 {strides = array<i32>} : memref<2x8x32xf32, #tpu.memory_space<vmem>>, vector<2x8x8xf32>,
    %51 = vector.extract_strided_slice %2 {offsets = [0, 0, 16], sizes = [2, 8, 8], strides = [1, 1, 1]} : vector<2x8x96xf32> to vector<2x8x8xf32>
    %52 = vector.extract_strided_slice %2 {offsets = [0, 0, 48], sizes = [2, 8, 8], strides = [1, 1, 1]} : vector<2x8x96xf32> to vector<2x8x8xf32>
    %53 = vector.extract_strided_slice %2 {offsets = [0, 0, 80], sizes = [2, 8, 8], strides = [1, 1, 1]} : vector<2x8x96xf32> to vector<2x8x8xf32>
    "tpu.trace_start"() <{level = 10 : i32, message = "btd,bsd->bts"}> : () -> ()
    %cst_21 = arith.constant dense<0.000000e+00> : vector<2x8x8xf32>
    %54 = tpu.matmul %51, %52, %cst_21 {dimension_numbers = #tpu.dot_dimension_numbers<[2], [2], [1], [1], [0, 0, 0, 1, 1, 1], [0], [0]>} : vector<2x8x8xf32>, vector<2x8x8xf32>, vector<2x8x8xf32> -> vector<2x8x8xf32>
    "tpu.trace_stop"() : () -> ()
    %cst_22 = arith.constant 0.353553385 : f32
    %55 = vector.broadcast %cst_22 : f32 to vector<2x8x8xf32>
    %56 = arith.mulf %54, %55 : vector<2x8x8xf32>
    %cst_23 = arith.constant -1.000000e+30 : f32
    %57 = vector.shape_cast %6 : vector<1x8x8xi1> to vector<1x8x8xi1>
    %58 = vector.broadcast %57 : vector<1x8x8xi1> to vector<2x8x8xi1>
    %59 = vector.broadcast %cst_23 : f32 to vector<2x8x8xf32>
    %60 = arith.select %58, %56, %59 : vector<2x8x8xi1>, vector<2x8x8xf32>
    %cst_24 = arith.constant dense<0xFF800000> : vector<2x8xf32>
    %61 = vector.multi_reduction <maximumf>, %60, %cst_24 [2] : vector<2x8x8xf32> to vector<2x8xf32>
    %62 = vector.shape_cast %61 : vector<2x8xf32> to vector<2x8x1xf32>
    %63 = vector.broadcast %62 : vector<2x8x1xf32> to vector<2x8x8xf32>
    %64 = arith.subf %60, %63 : vector<2x8x8xf32>
    %65 = math.exp %64 : vector<2x8x8xf32>
    %cst_25 = arith.constant dense<0.000000e+00> : vector<2x8xf32>
    %66 = vector.multi_reduction <add>, %65, %cst_25 [2] : vector<2x8x8xf32> to vector<2x8xf32>
    %67 = vector.shape_cast %66 : vector<2x8xf32> to vector<2x8x1xf32>
    "tpu.trace_start"() <{level = 10 : i32, message = "bts,bsd->btd"}> : () -> ()
    %cst_26 = arith.constant dense<0.000000e+00> : vector<2x8x8xf32>
    %68 = tpu.matmul %65, %53, %cst_26 {dimension_numbers = #tpu.dot_dimension_numbers<[2], [1], [1], [2], [0, 0, 0, 1, 1, 2], [0], [0]>} : vector<2x8x8xf32>, vector<2x8x8xf32>, vector<2x8x8xf32> -> vector<2x8x8xf32>
    "tpu.trace_stop"() : () -> ()
    %69 = tpu.reciprocal %67 {approx = true} : vector<2x8x1xf32> -> vector<2x8x1xf32>
    %70 = vector.broadcast %69 : vector<2x8x1xf32> to vector<2x8x8xf32>
    %71 = arith.mulf %68, %70 : vector<2x8x8xf32>
    %c0_27 = arith.constant 0 : index
    %c0_28 = arith.constant 0 : index
    %c16 = arith.constant 16 : index
    %72 = vector.load %arg6[%c0_27, %c0_28, %c16] : memref<2x8x32xf32, #tpu.memory_space<vmem>>, vector<2x8x8xf32>
    tpu.vector_store %arg6[%c0_27, %c0_28, %c16], %71 {strides = array<i32>} : memref<2x8x32xf32, #tpu.memory_space<vmem>>, vector<2x8x8xf32>,
    %73 = vector.extract_strided_slice %2 {offsets = [0, 0, 24], sizes = [2, 8, 8], strides = [1, 1, 1]} : vector<2x8x96xf32> to vector<2x8x8xf32>
    %74 = vector.extract_strided_slice %2 {offsets = [0, 0, 56], sizes = [2, 8, 8], strides = [1, 1, 1]} : vector<2x8x96xf32> to vector<2x8x8xf32>
    %75 = vector.extract_strided_slice %2 {offsets = [0, 0, 88], sizes = [2, 8, 8], strides = [1, 1, 1]} : vector<2x8x96xf32> to vector<2x8x8xf32>
    "tpu.trace_start"() <{level = 10 : i32, message = "btd,bsd->bts"}> : () -> ()
    %cst_29 = arith.constant dense<0.000000e+00> : vector<2x8x8xf32>
    %76 = tpu.matmul %73, %74, %cst_29 {dimension_numbers = #tpu.dot_dimension_numbers<[2], [2], [1], [1], [0, 0, 0, 1, 1, 1], [0], [0]>} : vector<2x8x8xf32>, vector<2x8x8xf32>, vector<2x8x8xf32> -> vector<2x8x8xf32>
    "tpu.trace_stop"() : () -> ()
    %cst_30 = arith.constant 0.353553385 : f32
    %77 = vector.broadcast %cst_30 : f32 to vector<2x8x8xf32>
    %78 = arith.mulf %76, %77 : vector<2x8x8xf32>
    %cst_31 = arith.constant -1.000000e+30 : f32
    %79 = vector.shape_cast %6 : vector<1x8x8xi1> to vector<1x8x8xi1>
    %80 = vector.broadcast %79 : vector<1x8x8xi1> to vector<2x8x8xi1>
    %81 = vector.broadcast %cst_31 : f32 to vector<2x8x8xf32>
    %82 = arith.select %80, %78, %81 : vector<2x8x8xi1>, vector<2x8x8xf32>
    %cst_32 = arith.constant dense<0xFF800000> : vector<2x8xf32>
    %83 = vector.multi_reduction <maximumf>, %82, %cst_32 [2] : vector<2x8x8xf32> to vector<2x8xf32>
    %84 = vector.shape_cast %83 : vector<2x8xf32> to vector<2x8x1xf32>
    %85 = vector.broadcast %84 : vector<2x8x1xf32> to vector<2x8x8xf32>
    %86 = arith.subf %82, %85 : vector<2x8x8xf32>
    %87 = math.exp %86 : vector<2x8x8xf32>
    %cst_33 = arith.constant dense<0.000000e+00> : vector<2x8xf32>
    %88 = vector.multi_reduction <add>, %87, %cst_33 [2] : vector<2x8x8xf32> to vector<2x8xf32>
    %89 = vector.shape_cast %88 : vector<2x8xf32> to vector<2x8x1xf32>
    "tpu.trace_start"() <{level = 10 : i32, message = "bts,bsd->btd"}> : () -> ()
    %cst_34 = arith.constant dense<0.000000e+00> : vector<2x8x8xf32>
    %90 = tpu.matmul %87, %75, %cst_34 {dimension_numbers = #tpu.dot_dimension_numbers<[2], [1], [1], [2], [0, 0, 0, 1, 1, 2], [0], [0]>} : vector<2x8x8xf32>, vector<2x8x8xf32>, vector<2x8x8xf32> -> vector<2x8x8xf32>
    "tpu.trace_stop"() : () -> ()
    %91 = tpu.reciprocal %89 {approx = true} : vector<2x8x1xf32> -> vector<2x8x1xf32>
    %92 = vector.broadcast %91 : vector<2x8x1xf32> to vector<2x8x8xf32>
    %93 = arith.mulf %90, %92 : vector<2x8x8xf32>
    %c0_35 = arith.constant 0 : index
    %c0_36 = arith.constant 0 : index
    %c24 = arith.constant 24 : index
    %94 = vector.load %arg6[%c0_35, %c0_36, %c24] : memref<2x8x32xf32, #tpu.memory_space<vmem>>, vector<2x8x8xf32>
    tpu.vector_store %arg6[%c0_35, %c0_36, %c24], %93 {strides = array<i32>} : memref<2x8x32xf32, #tpu.memory_space<vmem>>, vector<2x8x8xf32>,
    %c0_37 = arith.constant 0 : index
    %c0_38 = arith.constant 0 : index
    %c0_39 = arith.constant 0 : index
    %95 = vector.load %arg6[%c0_37, %c0_38, %c0_39] : memref<2x8x32xf32, #tpu.memory_space<vmem>>, vector<2x8x32xf32>
    %c0_40 = arith.constant 0 : index
    %c0_41 = arith.constant 0 : index
    %96 = vector.load %arg3[%c0_40, %c0_41] : memref<32x32xf32, #tpu.memory_space<vmem>>, vector<32x32xf32>
    "tpu.trace_start"() <{level = 10 : i32, message = "btc,ck->btk"}> : () -> ()
    %cst_42 = arith.constant dense<0.000000e+00> : vector<2x8x32xf32>
    %97 = tpu.matmul %95, %96, %cst_42 {dimension_numbers = #tpu.dot_dimension_numbers<[2], [0], [0, 1], [1], [0, 0, 0, 1, 1, 1], [], []>} : vector<2x8x32xf32>, vector<32x32xf32>, vector<2x8x32xf32> -> vector<2x8x32xf32>
    "tpu.trace_stop"() : () -> ()
    %c0_43 = arith.constant 0 : index
    %c0_44 = arith.constant 0 : index
    %98 = vector.load %arg4[%c0_43, %c0_44] : memref<1x32xf32, #tpu.memory_space<vmem>>, vector<1x32xf32>
    %99 = vector.shape_cast %98 : vector<1x32xf32> to vector<1x1x32xf32>
    %100 = vector.broadcast %99 : vector<1x1x32xf32> to vector<2x8x32xf32>
    %101 = arith.addf %97, %100 : vector<2x8x32xf32>
    %c0_45 = arith.constant 0 : index
    %c0_46 = arith.constant 0 : index
    %c0_47 = arith.constant 0 : index
    %102 = vector.load %arg5[%c0_45, %c0_46, %c0_47] : memref<2x8x32xf32, #tpu.memory_space<vmem>>, vector<2x8x32xf32>
    tpu.vector_store %arg5[%c0_45, %c0_46, %c0_47], %101 {strides = array<i32>} : memref<2x8x32xf32, #tpu.memory_space<vmem>>, vector<2x8x32xf32>,
    return
  }
  func.func @transform_0(%arg0: i32) -> (i32, i32, i32) {
    %c0_i32 = arith.constant 0 : i32
    %c0_i32_0 = arith.constant 0 : i32
    %c0_i32_1 = arith.constant 0 : i32
    return %arg0, %c0_i32, %c0_i32_0 : i32, i32, i32
  }
  func.func @transform_1(%arg0: i32) -> (i32, i32) {
    %c0_i32 = arith.constant 0 : i32
    %c0_i32_0 = arith.constant 0 : i32
    %c0_i32_1 = arith.constant 0 : i32
    return %c0_i32, %c0_i32_0 : i32, i32
  }
  func.func @transform_2(%arg0: i32) -> (i32, i32) {
    %c0_i32 = arith.constant 0 : i32
    %c0_i32_0 = arith.constant 0 : i32
    %c0_i32_1 = arith.constant 0 : i32
    return %c0_i32, %c0_i32_0 : i32, i32
  }
  func.func @transform_3(%arg0: i32) -> (i32, i32) {
    %c0_i32 = arith.constant 0 : i32
    %c0_i32_0 = arith.constant 0 : i32
    %c0_i32_1 = arith.constant 0 : i32
    return %c0_i32, %c0_i32_0 : i32, i32
  }
  func.func @transform_4(%arg0: i32) -> (i32, i32, i32) {
    %c0_i32 = arith.constant 0 : i32
    %c0_i32_0 = arith.constant 0 : i32
    %c0_i32_1 = arith.constant 0 : i32
    return %arg0, %c0_i32, %c0_i32_0 : i32, i32, i32
  }
}

</mosaic_0001>

<bundles_post_ra>
// kernel: multi_head_attention.1
= control target key start
LH: loop header
LB: loop body
LE: loop exit
PB: predicated region body
PF: predicated region fallthrough
CT: control target
= control target key end

     0   :  { %s989_s0 = inlined_call_operand.vmem [shape: f32[2,8,32], index: 0, kind: input, shape index: {}]   ;;  %s990_s1 = inlined_call_operand.vmem [shape: f32[32,96], index: 1, kind: input, shape index: {}]   ;;  %s991_s2 = inlined_call_operand.vmem [shape: f32[32,32], index: 2, kind: input, shape index: {}]   ;;  %s992_s3 = inlined_call_operand.vmem [shape: f32[1,32], index: 3, kind: input, shape index: {}]   ;;  %s993_s4 = inlined_call_operand.hbm [shape: f32[2,8,32], index: 4, kind: output, shape index: {}]  }
   0x1   :  { %v23_v0 = vld [vmem:[%s990_s1 + $0x18] sm:$0xff]  ;;  %v22_v1 = vld [vmem:[%s990_s1 + $0x10] sm:$0xff]  ;;  %v21_v2 = vld [vmem:[%s990_s1 + $0x8] sm:$0xff] }
   0x2   :  { %43 = vmatpush.msra.mxu0 %v23_v0 }
   0x3   :  { %9 = vsyncpa [#allocation4], 0  ;;  %v20_v3 = vld [vmem:[%s990_s1] sm:$0xff]  ;;  %vm24_vm0 = vcmask 261120   ;;  %v19_v5 = vld [vmem:[%s989_s0 + $0x8] sm:$0xff]  ;;  %s803_s27 = smov 88   ;;  %v54_v28 = vlaneseq }
   0x4   :  { %44 = vmatpush.msra.mxu0 %v22_v1  ;;  %v18_v4 = vld [vmem:[%s989_s0] sm:$0xff]  ;;  %s804_s1 = smov 96   ;;  %s805_s28 = smov 80   ;;  %vm62_vm1 = vcmask 64512   ;;  %vm338_vm3 = vcmask 130112   ;;  %vm483_vm4 = vcmask 195712  }
   0x5   :  { %s806_s0 = smov 72   ;;  %s807_s29 = smov 120   ;;  %v55_v29 = vshrl.u32 %v54_v28, 7  ;;  %v57_v30 = vand.u32 127, %v54_v28  ;;  %vm628_vm5 = vcmask 261312  }
   0x6   :  { %45 = vmatpush.msra.mxu0 %v21_v2  ;;  %s808_s30 = smov 112   ;;  %s809_s5 = smov 104  }
   0x7   :  { %s810_s6 = smov 56   ;;  %s811_s7 = smov 64   ;;  %vm905_vm2 = vcmp.le.s32.totalorder %v57_v30, %v55_v29 }
   0x8   :  { %46 = vmatpush.msra.mxu0 %v20_v3  ;;  %s812_s8 = smov 40   ;;  %s813_s9 = smov 48  }
   0x9   :  { %690 = vmatmul.msk.f32.vlgmr.msra.gmra.mxu0 %vm24_vm0, %v18_v4  ;;  %s814_s10 = smov 8   ;;  %s815_s11 = smov 16  }
   0xa   :  { %s816_s12 = smov 24   ;;  %s678_s26 = sshll.u32 %s993_s4, 4  ;;  %s679_s26 = int_to_ptr.hbm [resolvable:$true] %s678_s26 }
  0x11   :  { %691 = vmatmul.msk.f32.gmra.mxu0 %vm24_vm0, %v19_v5 }
  0x86   :  { %v864_v6 = vpop.f32.mrf.mxu0 }
  0x87   :  { %198 = vrot.lane.b32.xlu2 %v864_v6, %s803_s27  ;;  %60 = vrot.lane.b32.xlu0 %v864_v6, %s804_s1 }
  0x8e   :  { %v868_v7 = vpop.f32.mrf.mxu0 }
  0x8f   :  { %343 = vrot.lane.b32.xlu2 %v864_v6, %s805_s28  ;;  %226 = vrot.lane.b32.xlu1 %v868_v7, %s803_s27  ;;  %v739_v8 = vpack.i.bf16 %v868_v7, %v864_v6  ;;  %s818_s27 = smov 128  }
  0x90   :  { %88 = vrot.lane.b32.xlu0 %v868_v7, %s804_s1 }
  0x97   :  { %488 = vrot.lane.b32.xlu2 %v864_v6, %s806_s0  ;;  %224 = vrot.lane.b32.xlu1 %v868_v7, %s807_s29 }
  0x98   :  { %196 = vrot.lane.b32.xlu0 %v864_v6, %s807_s29 }
  0x9f   :  { %369 = vrot.lane.b32.xlu2 %v868_v7, %s808_s30  ;;  %341 = vrot.lane.b32.xlu1 %v864_v6, %s808_s30 }
  0xa0   :  { %486 = vrot.lane.b32.xlu0 %v864_v6, %s809_s5 }
  0xa7   :  { %740 = vrot.lane.b32.xlu2 %v739_v8, %s810_s6  ;;  %371 = vrot.lane.b32.xlu1 %v868_v7, %s805_s28 }
  0xa8   :  { %516 = vrot.lane.b32.xlu0 %v868_v7, %s806_s0 }
  0xaf   :  { %514 = vrot.lane.b32.xlu1 %v868_v7, %s809_s5 }
  0xb7   :  { %735 = vrot.lane.b32.xlu1 %v739_v8, %s811_s7 }
  0xe1   :  { %v199_v9 = vpop.permute.xlu2 %198 }
  0xe9   :  { %v344_v10 = vpop.permute.xlu2 %343 }
  0xf1   :  { %v489_v11 = vpop.permute.xlu2 %488 }
  0xf9   :  { %v61_v12 = vpop.permute.xlu0 %60  ;;  %v370_v13 = vpop.permute.xlu2 %369 }
  0xfa   :  { %692 = vmatpush.xpose.msk.msra.mxu1 %vm62_vm1, %v61_v12 }
  0xfd   :  { %693 = vmatmul.msk.f32.vlgmr.msra.gmra.mxu1 %vm62_vm1, %v864_v6 }
  0xfe   :  { %698 = vmatpush.xpose.msk.msrb.mxu1 %vm62_vm1, %v199_v9 }
 0x101   :  { %v888_v14 = vpop.permute.xlu2 %740  ;;  %v227_v15 = vpop.permute.xlu1 %226 }
 0x102   :  { %v743_v16 = vunpack.i.h.bf16 %v888_v14  ;;  %v89_v17 = vpop.permute.xlu0 %88  ;;  %700 = vmatpush.xpose.msk.msra.mxu2 %vm62_vm1, %v227_v15 }
 0x103   :  { %694 = vmatpush.xpose.msk.msrb.mxu0 %vm62_vm1, %v89_v17 }
 0x104   :  { %321 = vmatpush.msra.mxu1 %v743_v16 }
 0x106   :  { %704 = vmatpush.xpose.msk.msrb.mxu2 %vm62_vm1, %v344_v10  ;;  %695 = vmatmul.msk.f32.vlgmr.msrb.gmra.mxu0 %vm62_vm1, %v868_v7 }
 0x109   :  { %v225_v18 = vpop.permute.xlu1 %224 }
 0x10a   :  { %v197_v19 = vpop.permute.xlu0 %196  ;;  %701 = vmatmul.msk.f32.vlgmr.msra.gmra.mxu2 %vm62_vm1, %v225_v18 }
 0x10b   :  { %699 = vmatmul.msk.f32.vlgmr.msrb.gmra.mxu1 %vm62_vm1, %v197_v19  ;;  %710 = vmatpush.xpose.msk.msra.mxu2 %vm62_vm1, %v489_v11 }
 0x111   :  { %v342_v20 = vpop.permute.xlu1 %341 }
 0x112   :  { %v487_v21 = vpop.permute.xlu0 %486  ;;  %705 = vmatmul.msk.f32.vlgmr.msrb.gmra.mxu2 %vm62_vm1, %v342_v20 }
 0x119   :  { %v372_v22 = vpop.permute.xlu1 %371 }
 0x11a   :  { %v517_v23 = vpop.permute.xlu0 %516  ;;  %706 = vmatpush.xpose.msk.msra.mxu0 %vm62_vm1, %v372_v22  ;;  %711 = vmatmul.msk.f32.vlgmr.msra.gmra.mxu2 %vm62_vm1, %v487_v21 }
 0x11d   :  { %707 = vmatmul.msk.f32.vlgmr.msra.gmra.mxu0 %vm62_vm1, %v370_v13 }
 0x11e   :  { %712 = vmatpush.xpose.msk.msrb.mxu0 %vm62_vm1, %v517_v23 }
 0x121   :  { %v515_v24 = vpop.permute.xlu1 %514 }
 0x125   :  { %713 = vmatmul.msk.f32.vlgmr.msrb.gmra.mxu0 %vm62_vm1, %v515_v24 }
 0x129   :  { %v736_v25 = vpop.permute.xlu1 %735 }
 0x12a   :  { %v737_v26 = vunpack.i.l.bf16 %v736_v25  ;;  %v738_v27 = vunpack.i.h.bf16 %v736_v25 }
 0x12c   :  { %159 = vmatpush.msra.mxu3 %v737_v26 }
 0x12e   :  { %185 = vmatpush.msrb.mxu3 %v738_v27 }
 0x17a   :  { %v84_v31 = vpop.f32.mrf.mxu1 }
 0x17b   :  { %v114_v33 = vmul.f32 0.35355338, %v84_v31 }
 0x17d   :  { %v118_v34 = vsel %vm905_vm2, %v114_v33, -1e+30 }
 0x17e   :  { %v120_v35 = vsel %vm62_vm1, %v118_v34, -inf }
 0x17f   :  { %121 = vmax.xlane.f32.xlu2 %v120_v35 }
 0x183   :  { %v111_v36 = vpop.f32.mrf.mxu0 }
 0x184   :  { %v115_v37 = vmul.f32 0.35355338, %v111_v36 }
 0x186   :  { %v119_v38 = vsel %vm905_vm2, %v115_v37, -1e+30 }
 0x187   :  { %v123_v39 = vsel %vm62_vm1, %v119_v38, -inf }
 0x188   :  { %124 = vmax.xlane.f32.xlu0 %v123_v39  ;;  %v221_v40 = vpop.f32.mrf.mxu1 }
 0x189   :  { %v252_v41 = vmul.f32 0.35355338, %v221_v40 }
 0x18b   :  { %v254_v42 = vsel %vm905_vm2, %v252_v41, -1e+30 }
 0x18c   :  { %v256_v43 = vsel %vm62_vm1, %v254_v42, -inf }
 0x18d   :  { %257 = vmax.xlane.f32.xlu1 %v256_v43  ;;  %v249_v44 = vpop.f32.mrf.mxu2 }
 0x18e   :  { %v253_v45 = vmul.f32 0.35355338, %v249_v44 }
 0x190   :  { %v255_v46 = vsel %vm905_vm2, %v253_v45, -1e+30 }
 0x191   :  { %v259_v47 = vsel %vm62_vm1, %v255_v46, -inf }
 0x192   :  { %260 = vmax.xlane.f32.xlu0 %v259_v47 }
 0x195   :  { %v366_v48 = vpop.f32.mrf.mxu2 }
 0x196   :  { %v397_v61 = vmul.f32 0.35355338, %v366_v48 }
 0x197   :  { %564 = vrot.lane.b32.xlu2 %v864_v6, %s812_s8 }
 0x198   :  { %v934_v62 = vsel %vm905_vm2, %v397_v61, -1e+30 }
 0x199   :  { %v401_v63 = vsel %vm62_vm1, %v934_v62, -inf }
 0x19a   :  { %v394_v49 = vpop.f32.mrf.mxu0 }
 0x19b   :  { %v398_v50 = vmul.f32 0.35355338, %v394_v49 }
 0x19d   :  { %v400_v51 = vsel %vm905_vm2, %v398_v50, -1e+30  ;;  %v511_v55 = vpop.f32.mrf.mxu2 }
 0x19e   :  { %v404_v52 = vsel %vm62_vm1, %v400_v51, -inf  ;;  %v542_v58 = vmul.f32 0.35355338, %v511_v55 }
 0x19f   :  { %405 = vmax.xlane.f32.xlu0 %v404_v52 }
 0x1a0   :  { %v544_v59 = vsel %vm905_vm2, %v542_v58, -1e+30 }
 0x1a1   :  { %v546_v60 = vsel %vm62_vm1, %v544_v59, -inf }
 0x1a2   :  { %v539_v53 = vpop.f32.mrf.mxu0 }
 0x1a3   :  { %v543_v54 = vmul.f32 0.35355338, %v539_v53 }
 0x1a5   :  { %v545_v56 = vsel %vm905_vm2, %v543_v54, -1e+30 }
 0x1a6   :  { %419 = vrot.lane.b32.xlu1 %v864_v6, %s813_s9  ;;  %v549_v57 = vsel %vm62_vm1, %v545_v56, -inf  ;;  %v742_v6 = vunpack.i.l.bf16 %v888_v14 }
 0x1a7   :  { %550 = vmax.xlane.f32.xlu0 %v549_v57 }
 0x1af   :  { %547 = vmax.xlane.f32.xlu0 %v546_v60 }
 0x1c0   :  { %402 = vmax.xlane.f32.xlu2 %v401_v63 }
 0x1c3   :  { %590 = vrot.lane.b32.xlu0 %v868_v7, %s812_s8 }
 0x1d8   :  { %445 = vrot.lane.b32.xlu2 %v868_v7, %s813_s9 }
 0x1f2   :  { %v122_v0 = vpop.xlane.xlu2 %121 }
 0x1f3   :  { %v126_v1 = vsub.f32 %v118_v34, %v122_v0 }
 0x1f5   :  { %v128_v2 = vmul.f32 1.442695, %v126_v1 }
 0x1f7   :  { %745 = vpow2.f32 %v128_v2 }
 0x1fa   :  { %v565_v23 = vpop.permute.xlu2 %564 }
 0x1fb   :  { %v125_v3 = vpop.xlane.xlu0 %124 }
 0x1fc   :  { %v127_v4 = vsub.f32 %v119_v38, %v125_v3 }
 0x1fd   :  { %v940_v5 = vpop.eup %745 }
 0x1fe   :  { %v130_v8 = vmul.f32 1.442695, %v127_v4  ;;  %696 = vmatmul.msk.f32.vlgmr.msra.gmra.mxu3 %vm62_vm1, %v940_v5  ;;  %v132_v44 = vsel %vm62_vm1, %v940_v5, 0.0 }
 0x1ff   :  { %295 = vmatpush.msra.mxu3 %v742_v6 }
 0x200   :  { %747 = vpow2.f32 %v130_v8  ;;  %v258_v9 = vpop.xlane.xlu1 %257 }
 0x201   :  { %v262_v10 = vsub.f32 %v254_v42, %v258_v9 }
 0x203   :  { %v264_v11 = vmul.f32 1.442695, %v262_v10 }
 0x205   :  { %749 = vpow2.f32 %v264_v11  ;;  %v261_v7 = vpop.xlane.xlu0 %260 }
 0x206   :  { %v748_v12 = vpop.eup %747  ;;  %v263_v13 = vsub.f32 %v255_v46, %v261_v7 }
 0x207   :  { %697 = vmatmul.msk.f32.vlgmr.msrb.gmra.mxu3 %vm62_vm1, %v748_v12  ;;  %v135_v26 = vsel %vm62_vm1, %v748_v12, 0.0 }
 0x208   :  { %v266_v15 = vmul.f32 1.442695, %v263_v13 }
 0x20a   :  { %751 = vpow2.f32 %v266_v15 }
 0x20b   :  { %v750_v16 = vpop.eup %749 }
 0x20c   :  { %v268_v14 = vsel %vm62_vm1, %v750_v16, 0.0 }
 0x20d   :  { %269 = vadd.xlane.f32.xlu1 %v268_v14  ;;  %v636_v14 = vld [vmem:[%s991_s2 + $0x18] sm:$0xff] }
 0x20e   :  { %659 = vmatpush.msrb.mxu2 %v636_v14 }
 0x20f   :  { %702 = vmatmul.msk.f32.vlgmr.msra.gmra.mxu3 %vm62_vm1, %v750_v16 }
 0x210   :  { %v752_v17 = vpop.eup %751 }
 0x211   :  { %703 = vmatmul.msk.f32.vlgmr.msra.gmra.mxu1 %vm62_vm1, %v752_v17  ;;  %v271_v20 = vsel %vm62_vm1, %v752_v17, 0.0  ;;  %v635_v17 = vld [vmem:[%s991_s2 + $0x10] sm:$0xff] }
 0x212   :  { %v406_v18 = vpop.xlane.xlu0 %405  ;;  %660 = vmatpush.msrb.mxu2 %v635_v17 }
 0x213   :  { %v408_v19 = vsub.f32 %v400_v51, %v406_v18  ;;  %v634_v18 = vld [vmem:[%s991_s2 + $0x8] sm:$0xff] }
 0x214   :  { %661 = vmatpush.msrb.mxu2 %v634_v18 }
 0x215   :  { %v411_v21 = vmul.f32 1.442695, %v408_v19  ;;  %272 = vadd.xlane.f32.xlu1 %v271_v20  ;;  %v633_v19 = vld [vmem:[%s991_s2] sm:$0xff]  ;;  %s817_s2 = smov [#allocation3]  }
 0x216   :  { %662 = vmatpush.msrb.mxu2 %v633_v19  ;;  %s676_s23 = sshll.u32 %s817_s2, 4  ;;  %s677_s23 = int_to_ptr.vmem [resolvable:$true] %s676_s23 }
 0x217   :  { %753 = vpow2.f32 %v411_v21 }
 0x218   :  { %v420_v22 = vpop.permute.xlu1 %419 }
 0x219   :  { %440 = vmatpush.msrb.mxu3 %v420_v22 }
 0x21a   :  { %v551_v24 = vpop.xlane.xlu0 %550 }
 0x21b   :  { %585 = vmatpush.msra.mxu3 %v565_v23  ;;  %v553_v25 = vsub.f32 %v545_v56, %v551_v24 }
 0x21d   :  { %v754_v27 = vpop.eup %753  ;;  %v556_v28 = vmul.f32 1.442695, %v553_v25  ;;  %136 = vadd.xlane.f32.xlu1 %v135_v26  ;;  %v744_v25 = vld [vmem:[%s992_s3] ss:$0 sm:$0xff] }
 0x21e   :  { %v416_v29 = vsel %vm62_vm1, %v754_v27, 0.0 }
 0x21f   :  { %755 = vpow2.f32 %v556_v28  ;;  %417 = vadd.xlane.f32.xlu2 %v416_v29 }
 0x222   :  { %v548_v30 = vpop.xlane.xlu0 %547 }
 0x223   :  { %v552_v31 = vsub.f32 %v544_v59, %v548_v30 }
 0x225   :  { %v756_v32 = vpop.eup %755  ;;  %v554_v33 = vmul.f32 1.442695, %v552_v31 }
 0x226   :  { %v561_v34 = vsel %vm62_vm1, %v756_v32, 0.0 }
 0x227   :  { %757 = vpow2.f32 %v554_v33  ;;  %562 = vadd.xlane.f32.xlu1 %v561_v34 }
 0x22d   :  { %v758_v35 = vpop.eup %757 }
 0x22e   :  { %v558_v36 = vsel %vm62_vm1, %v758_v35, 0.0 }
 0x22f   :  { %559 = vadd.xlane.f32.xlu0 %v558_v36 }
 0x233   :  { %v403_v37 = vpop.xlane.xlu2 %402 }
 0x234   :  { %v407_v38 = vsub.f32 %v934_v62, %v403_v37 }
 0x235   :  { %v591_v41 = vpop.permute.xlu0 %590 }
 0x236   :  { %v409_v39 = vmul.f32 1.442695, %v407_v38 }
 0x238   :  { %759 = vpow2.f32 %v409_v39 }
 0x23b   :  { %v446_v40 = vpop.permute.xlu2 %445 }
 0x23c   :  { %466 = vmatpush.msrb.mxu1 %v446_v40 }
 0x23d   :  { %709 = vmatmul.msk.f32.vlgmr.msrb.gmra.mxu1 %vm62_vm1, %v754_v27 }
 0x23e   :  { %v760_v42 = vpop.eup %759  ;;  %611 = vmatpush.msra.mxu1 %v591_v41 }
 0x23f   :  { %708 = vmatmul.msk.f32.vlgmr.msrb.gmra.mxu3 %vm62_vm1, %v760_v42  ;;  %v413_v43 = vsel %vm62_vm1, %v760_v42, 0.0 }
 0x240   :  { %414 = vadd.xlane.f32.xlu2 %v413_v43 }
 0x245   :  { %715 = vmatmul.msk.f32.vlgmr.msra.gmra.mxu1 %vm62_vm1, %v756_v32 }
 0x247   :  { %714 = vmatmul.msk.f32.vlgmr.msra.gmra.mxu3 %vm62_vm1, %v758_v35 }
 0x248   :  { %133 = vadd.xlane.f32.xlu2 %v132_v44 }
 0x280   :  { %v270_v45 = vpop.xlane.xlu1 %269 }
 0x281   :  { %v161_v46 = vpop.f32.mrf.mxu3  ;;  %761 = vrcp.f32 %v270_v45 }
 0x287   :  { %v762_v50 = vpop.eup %761 }
 0x288   :  { %v273_v47 = vpop.xlane.xlu1 %272 }
 0x28a   :  { %v187_v48 = vpop.f32.mrf.mxu3 }
 0x28e   :  { %v323_v55 = vpop.f32.mrf.mxu1 }
 0x290   :  { %v137_v49 = vpop.xlane.xlu1 %136 }
 0x291   :  { %763 = vrcp.f32 %v137_v49 }
 0x292   :  { %765 = vrcp.f32 %v273_v47  ;;  %v297_v51 = vpop.f32.mrf.mxu3  ;;  %v418_v58 = vpop.xlane.xlu2 %417 }
 0x293   :  { %v328_v52 = vmul.f32 %v762_v50, %v297_v51 }
 0x295   :  { %332 = vrot.lane.b32.xlu0 %v328_v52, %s814_s10 }
 0x297   :  { %v764_v53 = vpop.eup %763 }
 0x298   :  { %v766_v54 = vpop.eup %765  ;;  %v193_v56 = vmul.f32 %v764_v53, %v187_v48 }
 0x299   :  { %v329_v57 = vmul.f32 %v766_v54, %v323_v55 }
 0x29a   :  { %195 = vst.msk [vmem:[#allocation2 + $0x8] sm:$0xff] %vm62_vm1, %v193_v56  ;;  %v563_v60 = vpop.xlane.xlu1 %562 }
 0x29b   :  { %767 = vrcp.f32 %v563_v60 }
 0x29d   :  { %334 = vrot.lane.b32.xlu0 %v329_v57, %s814_s10 }
 0x2a1   :  { %v768_v63 = vpop.eup %767 }
 0x2a2   :  { %v560_v1 = vpop.xlane.xlu0 %559 }
 0x2b3   :  { %v415_v59 = vpop.xlane.xlu2 %414 }
 0x2b4   :  { %769 = vrcp.f32 %v415_v59 }
 0x2ba   :  { %v468_v61 = vpop.f32.mrf.mxu1  ;;  %v770_v0 = vpop.eup %769 }
 0x2bb   :  { %v134_v62 = vpop.xlane.xlu2 %133 }
 0x2bc   :  { %771 = vrcp.f32 %v134_v62 }
 0x2bd   :  { %773 = vrcp.f32 %v418_v58 }
 0x2be   :  { %775 = vrcp.f32 %v560_v1 }
 0x2c2   :  { %v772_v2 = vpop.eup %771  ;;  %v442_v3 = vpop.f32.mrf.mxu3 }
 0x2c3   :  { %v613_v4 = vpop.f32.mrf.mxu1  ;;  %v473_v5 = vmul.f32 %v770_v0, %v442_v3  ;;  %v192_v8 = vmul.f32 %v772_v2, %v161_v46  ;;  %v774_v9 = vpop.eup %773 }
 0x2c4   :  { %v619_v6 = vmul.f32 %v768_v63, %v613_v4  ;;  %v776_v10 = vpop.eup %775  ;;  %v474_v7 = vmul.f32 %v774_v9, %v468_v61 }
 0x2c5   :  { %477 = vrot.lane.b32.xlu2 %v473_v5, %s815_s11  ;;  %194 = vst.msk [vmem:[#allocation2] sm:$0xff] %vm62_vm1, %v192_v8 }
 0x2c6   :  { %624 = vrot.lane.b32.xlu0 %v619_v6, %s816_s12 }
 0x2ca   :  { %v587_v11 = vpop.f32.mrf.mxu3 }
 0x2cb   :  { %v618_v12 = vmul.f32 %v776_v10, %v587_v11 }
 0x2cd   :  { %479 = vrot.lane.b32.xlu2 %v474_v7, %s815_s11  ;;  %622 = vrot.lane.b32.xlu1 %v618_v12, %s816_s12 }
 0x307   :  { %v333_v13 = vpop.permute.xlu0 %332 }
 0x308   :  { %339 = vst.msk [vmem:[#allocation2] sm:$0xff] %vm338_vm3, %v333_v13 }
 0x30f   :  { %v335_v15 = vpop.permute.xlu0 %334 }
 0x310   :  { %340 = vst.msk [vmem:[#allocation2 + $0x8] sm:$0xff] %vm338_vm3, %v335_v15 }
 0x31f   :  { %v478_v16 = vpop.permute.xlu2 %477 }
 0x320   :  { %484 = vst.msk [vmem:[#allocation2] sm:$0xff] %vm483_vm4, %v478_v16 }
 0x327   :  { %v480_v20 = vpop.permute.xlu2 %479 }
 0x328   :  { %485 = vst.msk [vmem:[#allocation2 + $0x8] sm:$0xff] %vm483_vm4, %v480_v20 }
 0x338   :  { %v625_v21 = vpop.permute.xlu0 %624 }
 0x339   :  { %630 = vst.msk [vmem:[#allocation2 + $0x8] sm:$0xff] %vm628_vm5, %v625_v21 }
 0x33f   :  { %v623_v22 = vpop.permute.xlu1 %622 }
 0x340   :  { %629 = vst.msk [vmem:[#allocation2] sm:$0xff] %vm628_vm5, %v623_v22  ;;  %v632_v24 = vld [vmem:[#allocation2 + $0x8] sm:$0xff] }
 0x347   :  { %v631_v23 = vld [vmem:[#allocation2] sm:$0xff] }
 0x348   :  { %716 = vmatmul.msk.f32.vlgmr.msrb.gmra.mxu2 %vm24_vm0, %v631_v23 }
 0x350   :  { %717 = vmatmul.msk.f32.gmra.mxu2 %vm24_vm0, %v632_v24 }
 0x3cb   :  { %v664_v26 = vpop.f32.mrf.mxu2 }
 0x3cc   :  { %v665_v27 = vadd.f32 %v744_v25, %v664_v26 }
 0x3ce   :  { %670 = vst.msk [vmem:[#allocation3] sm:$0xff] %vm24_vm0, %v665_v27 }
 0x3d3   :  { %v667_v28 = vpop.f32.mrf.mxu2 }
 0x3d4   :  { %v668_v29 = vadd.f32 %v744_v25, %v667_v28 }
 0x3d6   :  { %671 = vst.msk [vmem:[#allocation3 + $0x8] sm:$0xff] %vm24_vm0, %v668_v29 }
 0x3d7   :  { %684 = dma.vmem_to_hbm [thread:$0]  %s677_s23, 256, %s679_s26, [#allocation4], %s818_s27, %s818_s27, %s814_s10  }
 0x3d8   :  { %801 = dma.done.wait [#allocation4], 256  }
 0x3d9   :  { %802 = vsyncadd [#allocation4], 4294967040 }
 0x3da   :  { %689 = vsyncpa [#allocation4], 1 }

</bundles_post_ra>
